<compile_context>
chip_gen: v6e
topology: v6e:2x2x1
jax: 0.10.0
libtpu: 0.0.40
codegen_flags: <defaults>
</compile_context>

<pallas_src>
import math
import functools

import jax
import jax.numpy as jnp
from jax import lax
from jax.experimental import pallas as pl
from jax.experimental.pallas import tpu as pltpu


_VMEM_LIMIT = 40 * 1024 * 1024   # explicit ceiling; headroom under v7x's 64 MiB VMEM


# ----------------------------------------------------------------------------
# Kernels
# ----------------------------------------------------------------------------

def _linear_nk_kernel(x_ref, w_ref, b_ref, o_ref, acc_ref, *, mxu_dtype):
    """y = x @ W.T + b with W stored (out, in); K accumulated over grid axis 2."""
    k = pl.program_id(2)

    @pl.when(k == 0)
    def _():
        acc_ref[...] = jnp.zeros_like(acc_ref)

    xd = x_ref[...]                      # (tm, tk)
    wd = w_ref[...]                      # (tn, tk)
    if mxu_dtype is not None:
        xd = xd.astype(mxu_dtype)
        wd = wd.astype(mxu_dtype)
    # Contract the minor dims of both operands -> (tm, tn); no materialized .T.
    # TODO(synk): confirm on a v6e/v7x bundle dump that this contraction emits
    # no per-K vxpose of the weight tile (only 2 XLU units); if it does, switch
    # the eval/fused paths to the (K, N) presentation used by the precompose path.
    acc_ref[...] += lax.dot_general(
        xd, wd,
        dimension_numbers=(((1,), (1,)), ((), ())),
        preferred_element_type=jnp.float32)

    @pl.when(k == pl.num_programs(2) - 1)
    def _():
        o_ref[...] = (acc_ref[...] + b_ref[...]).astype(o_ref.dtype)


def _linear_kn_kernel(x_ref, w_ref, b_ref, o_ref, acc_ref, *, mxu_dtype):
    """y = x @ W + b with W stored (in, out) -- MXU-canonical layout."""
    k = pl.program_id(2)

    @pl.when(k == 0)
    def _():
        acc_ref[...] = jnp.zeros_like(acc_ref)

    xd = x_ref[...]                      # (tm, tk)
    wd = w_ref[...]                      # (tk, tn), possibly already bf16
    if mxu_dtype is not None:
        xd = xd.astype(mxu_dtype)
        wd = wd.astype(mxu_dtype)
    acc_ref[...] += lax.dot_general(
        xd, wd,
        dimension_numbers=(((1,), (0,)), ((), ())),
        preferred_element_type=jnp.float32)

    @pl.when(k == pl.num_programs(2) - 1)
    def _():
        o_ref[...] = (acc_ref[...] + b_ref[...]).astype(o_ref.dtype)


def _noisy_linear_kernel(x_ref, wmu_ref, wsig_ref, weps_ref,
                         bmu_ref, bsig_ref, beps_ref, o_ref, acc_ref,
                         *, mxu_dtype):
    """Fused noisy linear: compose the W tile on the VPU, matmul on the MXU."""
    k = pl.program_id(2)

    @pl.when(k == 0)
    def _():
        acc_ref[...] = jnp.zeros_like(acc_ref)

    # Compose in f32 on the VPU (sigma*eps auto-promotes if eps is bf16),
    # then feed the MXU in mxu_dtype (default bf16) with f32 accumulation.
    w = wmu_ref[...] + wsig_ref[...] * weps_ref[...]   # (tn, tk)
    xd = x_ref[...]                                    # (tm, tk)
    if mxu_dtype is not None:
        xd = xd.astype(mxu_dtype)
        w = w.astype(mxu_dtype)
    acc_ref[...] += lax.dot_general(
        xd, w,
        dimension_numbers=(((1,), (1,)), ((), ())),
        preferred_element_type=jnp.float32)

    @pl.when(k == pl.num_programs(2) - 1)
    def _():
        b = bmu_ref[...] + bsig_ref[...] * beps_ref[...]   # (1, tn), finalize only
        o_ref[...] = (acc_ref[...] + b).astype(o_ref.dtype)


def _compose_weight_kn_kernel(wmu_ref, wsig_ref, weps_ref, o_ref):
    """(tn, tk) blocks of mu/sigma/eps -> composed W block, transposed to (tk, tn).

    Emits W in MXU-canonical (K, N) layout and in o_ref.dtype (bf16 when the
    matmul feeds the MXU bf16), halving all downstream W reads.
    """
    w = wmu_ref[...] + wsig_ref[...] * weps_ref[...]
    o_ref[...] = w.T.astype(o_ref.dtype)


# ----------------------------------------------------------------------------
# pallas_call wrappers
# ----------------------------------------------------------------------------

def _weight_spec(block_shape, index_map, buffers):
    """Weight BlockSpec with optional deeper pipelining (v7x HBM-bound path)."""
    if buffers > 2 and hasattr(pl, "Buffered"):
        try:
            return pl.BlockSpec(block_shape, index_map,
                                pipeline_mode=pl.Buffered(buffers))
        except TypeError:     # pipeline_mode not supported by this jax version
            pass
    return pl.BlockSpec(block_shape, index_map)


def _tiled_linear(x_p, w_p, b_p, out_dtype, tm, tn, tk, mxu_dtype,
                  *, w_layout, weight_buffers=2):
    Mp, Kp = x_p.shape
    if w_layout == "nk":                 # W stored (out, in) -- PyTorch layout
        Np = w_p.shape[0]
        kernel = functools.partial(_linear_nk_kernel, mxu_dtype=mxu_dtype)
        w_spec = _weight_spec((tn, tk), lambda i, j, k: (j, k), weight_buffers)
    else:                                # "kn": W stored (in, out) -- canonical
        Np = w_p.shape[1]
        kernel = functools.partial(_linear_kn_kernel, mxu_dtype=mxu_dtype)
        w_spec = _weight_spec((tk, tn), lambda i, j, k: (k, j), weight_buffers)

    grid = (Mp // tm, Np // tn, Kp // tk)
    return pl.pallas_call(
        kernel,
        out_shape=jax.ShapeDtypeStruct((Mp, Np), out_dtype),
        grid_spec=pltpu.PrefetchScalarGridSpec(
            num_scalar_prefetch=0,
            grid=grid,
            in_specs=[
                pl.BlockSpec((tm, tk), lambda i, j, k: (i, k)),
                w_spec,
                pl.BlockSpec((1, tn), lambda i, j, k: (0, j)),
            ],
            out_specs=pl.BlockSpec((tm, tn), lambda i, j, k: (i, j)),
            scratch_shapes=[pltpu.VMEM((tm, tn), jnp.float32)],
        ),
        compiler_params=pltpu.CompilerParams(
            dimension_semantics=("parallel", "parallel", "arbitrary"),
            vmem_limit_bytes=_VMEM_LIMIT,
        ),
    )(x_p, w_p, b_p)


def _tiled_noisy_linear(x_p, wmu_p, wsig_p, weps_p, bmu_p, bsig_p, beps_p,
                        out_dtype, tm, tn, tk, mxu_dtype, *, weight_buffers=2):
    Mp, Kp = x_p.shape
    Np, _ = wmu_p.shape
    grid = (Mp // tm, Np // tn, Kp // tk)
    kernel = functools.partial(_noisy_linear_kernel, mxu_dtype=mxu_dtype)

    def w_spec():
        return _weight_spec((tn, tk), lambda i, j, k: (j, k), weight_buffers)

    def b_spec():
        return pl.BlockSpec((1, tn), lambda i, j, k: (0, j))

    return pl.pallas_call(
        kernel,
        out_shape=jax.ShapeDtypeStruct((Mp, Np), out_dtype),
        grid_spec=pltpu.PrefetchScalarGridSpec(
            num_scalar_prefetch=0,
            grid=grid,
            in_specs=[
                pl.BlockSpec((tm, tk), lambda i, j, k: (i, k)),
                w_spec(), w_spec(), w_spec(),
                b_spec(), b_spec(), b_spec(),
            ],
            out_specs=pl.BlockSpec((tm, tn), lambda i, j, k: (i, j)),
            scratch_shapes=[pltpu.VMEM((tm, tn), jnp.float32)],
        ),
        compiler_params=pltpu.CompilerParams(
            dimension_semantics=("parallel", "parallel", "arbitrary"),
            vmem_limit_bytes=_VMEM_LIMIT,
        ),
    )(x_p, wmu_p, wsig_p, weps_p, bmu_p, bsig_p, beps_p)


def _compose_weight_kn(wmu_p, wsig_p, weps_p, tn, tk, out_dtype):
    """One elementwise pass over the weights; output is (Kp, Np) in out_dtype."""
    Np, Kp = wmu_p.shape
    grid = (Np // tn, Kp // tk)

    def in_spec():
        return pl.BlockSpec((tn, tk), lambda i, j: (i, j))

    return pl.pallas_call(
        _compose_weight_kn_kernel,
        out_shape=jax.ShapeDtypeStruct((Kp, Np), out_dtype),
        grid_spec=pltpu.PrefetchScalarGridSpec(
            num_scalar_prefetch=0,
            grid=grid,
            in_specs=[in_spec(), in_spec(), in_spec()],
            out_specs=pl.BlockSpec((tk, tn), lambda i, j: (j, i)),
        ),
        compiler_params=pltpu.CompilerParams(
            dimension_semantics=("parallel", "parallel"),
            vmem_limit_bytes=_VMEM_LIMIT,
        ),
    )(wmu_p, wsig_p, weps_p)


# ----------------------------------------------------------------------------
# Public forward
# ----------------------------------------------------------------------------

def _round_up(x, m):
    return ((x + m - 1) // m) * m


def _pick_tile(size, align, max_tile, min_tile=None):
    """Pad `size` to a multiple of `align` and pick a tile that divides the
    padded extent (tile <= max_tile).  Prefers minimal padding; if the only
    divisor is degenerate (< min_tile), trades a little padding for a sane tile
    instead of a long skinny grid."""
    padded = _round_up(size, align)
    if padded <= max_tile:
        return padded, padded
    n_units = padded // align
    tile = align
    for d in range(max_tile // align, 0, -1):
        if n_units % d == 0:
            tile = d * align
            break
    if min_tile is not None and tile < min_tile:
        tile = min(min_tile, max_tile)
        padded = _round_up(size, tile)
    return padded, tile


def _pad2(a, rows, cols):
    r, c = a.shape
    if r == rows and c == cols:
        return a
    return jnp.pad(a, ((0, rows - r), (0, cols - c)))


def noisy_linear_forward(x, weight_mu, weight_sigma, weight_epsilon,
                         bias_mu, bias_sigma, bias_epsilon, *,
                         training=True, mxu_dtype=jnp.bfloat16,
                         max_tm=256, max_tn=256, max_tk=2048):
    """Pallas-backed NoisyLinear forward. x: (B, in_features) -> (B, out_features).

    mxu_dtype: dtype fed to the MXU (accumulation is always f32).  The default
    bf16 matches the bf16-native MXU on all of v5e/v6e/v7x and halves streamed
    operand bytes; pass None for exact f32 parity with the PyTorch reference.
    """
    B, in_f = x.shape
    out_f = weight_mu.shape[0]

    # ---- tile / padding selection ------------------------------------------
    # M: keep ragged batches on a single sublane-aligned M tile up to 512 rows
    # (B=300 -> Mp=tm=304, not 512); larger batches get a divisor-friendly tile.
    Bp = _round_up(B, 8)
    if Bp <= 512:
        Mp, tm = Bp, Bp
    else:
        Mp, tm = _pick_tile(B, 8, max_tm, min_tile=64)

    # N / K: pad only to the 128-lane minimum and pick tiles dividing the
    # padded extent (in_f=3136 -> Kp=3200, tk=640).  Large tk also reduces the
    # number of f32 accumulator sweeps (v5e's single vector-store slot).
    Np, tn = _pick_tile(out_f, 128, max_tn)
    Kp, tk = _pick_tile(in_f, 128, max_tk, min_tile=512)

    m_blocks = Mp // tm
    # v7x megacore: expose >= 2 blocks on the 'parallel' axes when the output
    # is wide enough so both TensorCores get work (near-neutral on v5e/v6e).
    if m_blocks * (Np // tn) == 1 and Np >= 256:
        tn = 128
    n_blocks = Np // tn
    k_blocks = Kp // tk

    # Small-batch (single M tile) forwards are HBM-bound on streamed weights:
    # deepen the weight pipeline to hide DMA issue latency (v7x 3.2 TB/s HBM).
    weight_buffers = 3 if (m_blocks == 1 and n_blocks * k_blocks >= 3) else 2

    x_p = _pad2(x, Mp, Kp)
    wmu_p = _pad2(weight_mu, Np, Kp)
    bmu_p = _pad2(bias_mu.reshape(1, out_f), 1, Np)

    if not training:
        # Eval: plain linear with mu params only (no sigma/epsilon HBM traffic).
        out_p = _tiled_linear(x_p, wmu_p, bmu_p, x.dtype, tm, tn, tk, mxu_dtype,
                              w_layout="nk", weight_buffers=weight_buffers)
        return out_p[:B, :out_f]

    wsig_p = _pad2(weight_sigma, Np, Kp)
    weps_p = _pad2(weight_epsilon, Np, Kp)
    bsig_p = _pad2(bias_sigma.reshape(1, out_f), 1, Np)
    beps_p = _pad2(bias_epsilon.reshape(1, out_f), 1, Np)

    if m_blocks >= 3:
        # Many M tiles: compose W once (single pass over the weights) in
        # MXU-canonical (K, N) layout -- in bf16 when the MXU is fed bf16 --
        # and reuse it across all M tiles.  Threshold is 3: at 2 tiles the
        # extra W write + launch is net-neutral-or-worse vs. the fused path.
        w_dtype = mxu_dtype if mxu_dtype is not None else weight_mu.dtype
        w_kn = _compose_weight_kn(wmu_p, wsig_p, weps_p, tn, tk, w_dtype)
        b_p = bmu_p + bsig_p * beps_p          # tiny (1, Np) compose in wrapper
        out_p = _tiled_linear(x_p, w_kn, b_p, x.dtype, tm, tn, tk, mxu_dtype,
                              w_layout="kn", weight_buffers=2)
    else:
        # Few M tiles: fuse the noisy-weight composition with the matmul.
        out_p = _tiled_noisy_linear(x_p, wmu_p, wsig_p, weps_p,
                                    bmu_p, bsig_p, beps_p,
                                    x.dtype, tm, tn, tk, mxu_dtype,
                                    weight_buffers=weight_buffers)
    return out_p[:B, :out_f]


# ----------------------------------------------------------------------------
# Parameter / noise initialization (matches reset_parameters + reset_noise)
# ----------------------------------------------------------------------------

def _scale_noise(key, size):
    x = jax.random.normal(key, (size,), dtype=jnp.float32)
    return jnp.sign(x) * jnp.sqrt(jnp.abs(x))


def init_noisy_linear(key, in_features, out_features, std_init=0.4,
                      noise_dtype=jnp.float32):
    """noise_dtype=jnp.bfloat16 halves the epsilon HBM bytes (the dominant
    traffic for small-batch forwards); f32 keeps exact PyTorch parity."""
    k_wmu, k_bmu, k_ein, k_eout, k_beps = jax.random.split(key, 5)

    mu_range = 1.0 / math.sqrt(in_features)
    weight_mu = jax.random.uniform(k_wmu, (out_features, in_features),
                                   minval=-mu_range, maxval=mu_range,
                                   dtype=jnp.float32)
    weight_sigma = jnp.full((out_features, in_features),
                            std_init / math.sqrt(in_features), dtype=jnp.float32)
    bias_mu = jax.random.uniform(k_bmu, (out_features,),
                                 minval=-mu_range, maxval=mu_range,
                                 dtype=jnp.float32)
    bias_sigma = jnp.full((out_features,),
                          std_init / math.sqrt(out_features), dtype=jnp.float32)

    eps_in = _scale_noise(k_ein, in_features)
    eps_out = _scale_noise(k_eout, out_features)
    weight_epsilon = jnp.outer(eps_out, eps_in).astype(noise_dtype)
    bias_epsilon = _scale_noise(k_beps, out_features).astype(noise_dtype)

    return dict(weight_mu=weight_mu, weight_sigma=weight_sigma,
                weight_epsilon=weight_epsilon,
                bias_mu=bias_mu, bias_sigma=bias_sigma,
                bias_epsilon=bias_epsilon)


# ----------------------------------------------------------------------------
# Self-test
# ----------------------------------------------------------------------------

if __name__ == "__main__":
    key = jax.random.PRNGKey(0)
    k1, kx1, k2, kx2, k3, kx3, k4, kx4 = jax.random.split(key, 8)

    def ref_forward(x, p, training=True):
        if training:
            w = p["weight_mu"] + p["weight_sigma"] * p["weight_epsilon"].astype(jnp.float32)
            b = p["bias_mu"] + p["bias_sigma"] * p["bias_epsilon"].astype(jnp.float32)
        else:
            w, b = p["weight_mu"], p["bias_mu"]
        return x @ w.T + b

    def run(fn, x, p):
        return jax.block_until_ready(fn(
            x, p["weight_mu"], p["weight_sigma"], p["weight_epsilon"],
            p["bias_mu"], p["bias_sigma"], p["bias_epsilon"]))

    fwd = jax.jit(functools.partial(noisy_linear_forward, training=True))
    fwd_f32 = jax.jit(functools.partial(noisy_linear_forward, training=True,
                                        mxu_dtype=None))
    fwd_eval = jax.jit(functools.partial(noisy_linear_forward, training=False))

    # 1) small RL-sized layer: fused single-tile path, bf16 MXU default.
    p1 = init_noisy_linear(k1, 32, 64, std_init=0.4)
    x1 = jax.random.normal(kx1, (8, 32), dtype=jnp.float32)
    y1 = run(fwd, x1, p1)
    assert y1.shape == (8, 64)
    assert jnp.allclose(y1, ref_forward(x1, p1), atol=5e-2, rtol=5e-2)

    # Eval path: plain linear with mu params only.
    y1e = run(fwd_eval, x1, p1)
    assert jnp.allclose(y1e, ref_forward(x1, p1, training=False),
                        atol=5e-2, rtol=5e-2)

    # 2) ragged shapes (B=300 stays a single 304-row M tile; tn split to 128):
    #    f32 escape hatch for exact parity, then the default bf16 path.
    p2 = init_noisy_linear(k2, 200, 130, std_init=0.4)
    x2 = jax.random.normal(kx2, (300, 200), dtype=jnp.float32)
    y2 = run(fwd_f32, x2, p2)
    assert y2.shape == (300, 130)
    assert jnp.allclose(y2, ref_forward(x2, p2), atol=2e-3, rtol=2e-3)
    y2b = run(fwd, x2, p2)
    assert jnp.allclose(y2b, ref_forward(x2, p2), atol=5e-2, rtol=5e-2)

    # 3) wide layer, tiny batch: HBM-bound fused path with Buffered(3) weights.
    p3 = init_noisy_linear(k3, 4096, 512, std_init=0.4)
    x3 = jax.random.normal(kx3, (8, 4096), dtype=jnp.float32)
    y3 = run(fwd, x3, p3)
    assert y3.shape == (8, 512)
    assert jnp.allclose(y3, ref_forward(x3, p3), atol=5e-2, rtol=5e-2)

    # 4) large batch: precomposed (K, N) bf16-weight path (>= 3 M tiles).
    p4 = init_noisy_linear(k4, 128, 128, std_init=0.4)
    x4 = jax.random.normal(kx4, (1040, 128), dtype=jnp.float32)
    y4 = run(fwd, x4, p4)
    assert y4.shape == (1040, 128)
    assert jnp.allclose(y4, ref_forward(x4, p4), atol=5e-2, rtol=5e-2)

    print("KERNEL_OK")
</pallas_src>

<mosaic_0001>
module attributes {stable_mosaic.version = 11 : i64} {
  func.func @_noisy_linear_kernel(%arg0: i32, %arg1: i32, %arg2: i32, %arg3: memref<8x128xf32, #tpu.memory_space<vmem>>, %arg4: memref<128x128xf32, #tpu.memory_space<vmem>>, %arg5: memref<128x128xf32, #tpu.memory_space<vmem>>, %arg6: memref<128x128xf32, #tpu.memory_space<vmem>>, %arg7: memref<1x128xf32, #tpu.memory_space<vmem>>, %arg8: memref<1x128xf32, #tpu.memory_space<vmem>>, %arg9: memref<1x128xf32, #tpu.memory_space<vmem>>, %arg10: memref<8x128xf32, #tpu.memory_space<vmem>>, %arg11: memref<8x128xf32, #tpu.memory_space<vmem>>) attributes {dimension_semantics = [#tpu.dimension_semantics<parallel>, #tpu.dimension_semantics<parallel>, #tpu.dimension_semantics<arbitrary>], iteration_bounds = array<i64: 1, 1, 1>, scalar_prefetch = 0 : i64, scratch_operands = 1 : i64, tpu.core_type = #tpu.core_type<tc>, window_params = [{transform_indices = @transform_0, window_bounds = array<i64: 8, 128>}, {transform_indices = @transform_1, window_bounds = array<i64: 128, 128>}, {transform_indices = @transform_2, window_bounds = array<i64: 128, 128>}, {transform_indices = @transform_3, window_bounds = array<i64: 128, 128>}, {transform_indices = @transform_4, window_bounds = array<i64: 1, 128>}, {transform_indices = @transform_5, window_bounds = array<i64: 1, 128>}, {transform_indices = @transform_6, window_bounds = array<i64: 1, 128>}, {transform_indices = @transform_7, window_bounds = array<i64: 8, 128>}]} {
    %c0_i32 = arith.constant 0 : i32
    %0 = arith.cmpi eq, %arg2, %c0_i32 : i32
    %1 = arith.extui %0 : i1 to i32
    %c0_i32_0 = arith.constant 0 : i32
    %2 = arith.cmpi ne, %1, %c0_i32_0 : i32
    scf.if %2 {
      %cst_14 = arith.constant 0.000000e+00 : f32
      %18 = vector.broadcast %cst_14 : f32 to vector<8x128xf32>
      %c0_15 = arith.constant 0 : index
      %c0_16 = arith.constant 0 : index
      %19 = vector.load %arg11[%c0_15, %c0_16] : memref<8x128xf32, #tpu.memory_space<vmem>>, vector<8x128xf32>
      tpu.vector_store %arg11[%c0_15, %c0_16], %18 {strides = array<i32>} : memref<8x128xf32, #tpu.memory_space<vmem>>, vector<8x128xf32>,
    } else {
    }
    %c0 = arith.constant 0 : index
    %c0_1 = arith.constant 0 : index
    %3 = vector.load %arg4[%c0, %c0_1] : memref<128x128xf32, #tpu.memory_space<vmem>>, vector<128x128xf32>
    %c0_2 = arith.constant 0 : index
    %c0_3 = arith.constant 0 : index
    %4 = vector.load %arg5[%c0_2, %c0_3] : memref<128x128xf32, #tpu.memory_space<vmem>>, vector<128x128xf32>
    %c0_4 = arith.constant 0 : index
    %c0_5 = arith.constant 0 : index
    %5 = vector.load %arg6[%c0_4, %c0_5] : memref<128x128xf32, #tpu.memory_space<vmem>>, vector<128x128xf32>
    %6 = arith.mulf %4, %5 : vector<128x128xf32>
    %7 = arith.addf %3, %6 : vector<128x128xf32>
    %c0_6 = arith.constant 0 : index
    %c0_7 = arith.constant 0 : index
    %8 = vector.load %arg3[%c0_6, %c0_7] : memref<8x128xf32, #tpu.memory_space<vmem>>, vector<8x128xf32>
    %9 = arith.truncf %8 : vector<8x128xf32> to vector<8x128xbf16>
    %10 = arith.truncf %7 : vector<128x128xf32> to vector<128x128xbf16>
    %c0_8 = arith.constant 0 : index
    %c0_9 = arith.constant 0 : index
    %11 = vector.load %arg11[%c0_8, %c0_9] : memref<8x128xf32, #tpu.memory_space<vmem>>, vector<8x128xf32>
    %cst = arith.constant dense<0.000000e+00> : vector<8x128xf32>
    %12 = tpu.matmul %9, %10, %cst {dimension_numbers = #tpu.dot_dimension_numbers<[1], [1], [0], [0], [0, 0, 1, 0], [], []>} : vector<8x128xbf16>, vector<128x128xbf16>, vector<8x128xf32> -> vector<8x128xf32>
    %13 = arith.addf %11, %12 : vector<8x128xf32>
    %c0_10 = arith.constant 0 : index
    %c0_11 = arith.constant 0 : index
    %14 = vector.load %arg11[%c0_10, %c0_11] : memref<8x128xf32, #tpu.memory_space<vmem>>, vector<8x128xf32>
    tpu.vector_store %arg11[%c0_10, %c0_11], %13 {strides = array<i32>} : memref<8x128xf32, #tpu.memory_space<vmem>>, vector<8x128xf32>,
    %c0_i32_12 = arith.constant 0 : i32
    %15 = arith.cmpi eq, %arg2, %c0_i32_12 : i32
    %16 = arith.extui %15 : i1 to i32
    %c0_i32_13 = arith.constant 0 : i32
    %17 = arith.cmpi ne, %16, %c0_i32_13 : i32
    scf.if %17 {
      %c0_14 = arith.constant 0 : index
      %c0_15 = arith.constant 0 : index
      %18 = vector.load %arg7[%c0_14, %c0_15] : memref<1x128xf32, #tpu.memory_space<vmem>>, vector<1x128xf32>
      %c0_16 = arith.constant 0 : index
      %c0_17 = arith.constant 0 : index
      %19 = vector.load %arg8[%c0_16, %c0_17] : memref<1x128xf32, #tpu.memory_space<vmem>>, vector<1x128xf32>
      %c0_18 = arith.constant 0 : index
      %c0_19 = arith.constant 0 : index
      %20 = vector.load %arg9[%c0_18, %c0_19] : memref<1x128xf32, #tpu.memory_space<vmem>>, vector<1x128xf32>
      %21 = arith.mulf %19, %20 : vector<1x128xf32>
      %22 = arith.addf %18, %21 : vector<1x128xf32>
      %c0_20 = arith.constant 0 : index
      %c0_21 = arith.constant 0 : index
      %23 = vector.load %arg11[%c0_20, %c0_21] : memref<8x128xf32, #tpu.memory_space<vmem>>, vector<8x128xf32>
      %24 = vector.broadcast %22 : vector<1x128xf32> to vector<8x128xf32>
      %25 = arith.addf %23, %24 : vector<8x128xf32>
      %c0_22 = arith.constant 0 : index
      %c0_23 = arith.constant 0 : index
      %26 = vector.load %arg10[%c0_22, %c0_23] : memref<8x128xf32, #tpu.memory_space<vmem>>, vector<8x128xf32>
      tpu.vector_store %arg10[%c0_22, %c0_23], %25 {strides = array<i32>} : memref<8x128xf32, #tpu.memory_space<vmem>>, vector<8x128xf32>,
    } else {
    }
    return
  }
  func.func @transform_0(%arg0: i32, %arg1: i32, %arg2: i32) -> (i32, i32) {
    %c0_i32 = arith.constant 0 : i32
    return %arg0, %arg2 : i32, i32
  }
  func.func @transform_1(%arg0: i32, %arg1: i32, %arg2: i32) -> (i32, i32) {
    %c0_i32 = arith.constant 0 : i32
    return %arg1, %arg2 : i32, i32
  }
  func.func @transform_2(%arg0: i32, %arg1: i32, %arg2: i32) -> (i32, i32) {
    %c0_i32 = arith.constant 0 : i32
    return %arg1, %arg2 : i32, i32
  }
  func.func @transform_3(%arg0: i32, %arg1: i32, %arg2: i32) -> (i32, i32) {
    %c0_i32 = arith.constant 0 : i32
    return %arg1, %arg2 : i32, i32
  }
  func.func @transform_4(%arg0: i32, %arg1: i32, %arg2: i32) -> (i32, i32) {
    %c0_i32 = arith.constant 0 : i32
    %c0_i32_0 = arith.constant 0 : i32
    return %c0_i32, %arg1 : i32, i32
  }
  func.func @transform_5(%arg0: i32, %arg1: i32, %arg2: i32) -> (i32, i32) {
    %c0_i32 = arith.constant 0 : i32
    %c0_i32_0 = arith.constant 0 : i32
    return %c0_i32, %arg1 : i32, i32
  }
  func.func @transform_6(%arg0: i32, %arg1: i32, %arg2: i32) -> (i32, i32) {
    %c0_i32 = arith.constant 0 : i32
    %c0_i32_0 = arith.constant 0 : i32
    return %c0_i32, %arg1 : i32, i32
  }
  func.func @transform_7(%arg0: i32, %arg1: i32, %arg2: i32) -> (i32, i32) {
    %c0_i32 = arith.constant 0 : i32
    return %arg0, %arg1 : i32, i32
  }
}

</mosaic_0001>

<bundles_post_ra>
// kernel: noisy_linear_forward.1
= control target key start
LH: loop header
LB: loop body
LE: loop exit
PB: predicated region body
PF: predicated region fallthrough
CT: control target
= control target key end

     0   :  { %v251_v3 = vmov 0.0   ;;  %vm252_vm0 = vmmov 0   ;;  %s462_s0 = inlined_call_operand.vmem [shape: f32[8,128], index: 0, kind: input, shape index: {}]   ;;  %s463_s1 = inlined_call_operand.vmem [shape: f32[128,128], index: 1, kind: input, shape index: {}]   ;;  %s464_s2 = inlined_call_operand.vmem [shape: f32[128,128], index: 2, kind: input, shape index: {}]   ;;  %s465_s3 = inlined_call_operand.vmem [shape: f32[128,128], index: 3, kind: input, shape index: {}]   ;;  %s466_s4 = inlined_call_operand.vmem [shape: f32[1,128], index: 4, kind: input, shape index: {}]   ;;  %s467_s5 = inlined_call_operand.vmem [shape: f32[1,128], index: 5, kind: input, shape index: {}]   ;;  %s468_s6 = inlined_call_operand.vmem [shape: f32[1,128], index: 6, kind: input, shape index: {}]   ;;  %s469_s7 = inlined_call_operand.hbm [shape: f32[8,128], index: 7, kind: output, shape index: {}]  }
   0x1   :  { %v47_v0 = vld [vmem:[%s463_s1 + $0x70] sm:$0xff]  ;;  %v48_v1 = vld [vmem:[%s463_s1 + $0x78] sm:$0xff]  ;;  %206 = vmatprep.subr.bf16.mxu0 %v251_v3  ;;  %222 = vmatprep.mubr.msk.bf16.mxu0 %vm252_vm0, %v251_v3  ;;  %v61_v9 = vld [vmem:[%s464_s2 + $0x60] sm:$0xff] }
   0x2   :  { %v63_v2 = vld [vmem:[%s464_s2 + $0x70] sm:$0xff]  ;;  %v64_v4 = vld [vmem:[%s464_s2 + $0x78] sm:$0xff]  ;;  %v62_v10 = vld [vmem:[%s464_s2 + $0x68] sm:$0xff] }
   0x3   :  { %v79_v5 = vld [vmem:[%s465_s3 + $0x70] sm:$0xff]  ;;  %v80_v6 = vld [vmem:[%s465_s3 + $0x78] sm:$0xff]  ;;  %v77_v11 = vld [vmem:[%s465_s3 + $0x60] sm:$0xff] }
   0x4   :  { %v95_v7 = vmul.f32 %v79_v5, %v63_v2  ;;  %v96_v8 = vmul.f32 %v80_v6, %v64_v4  ;;  %v78_v12 = vld [vmem:[%s465_s3 + $0x68] sm:$0xff]  ;;  %v93_v15 = vmul.f32 %v77_v11, %v61_v9  ;;  %v45_v17 = vld [vmem:[%s463_s1 + $0x60] sm:$0xff]  ;;  %v59_v22 = vld [vmem:[%s464_s2 + $0x50] sm:$0xff] }
   0x5   :  { %v94_v16 = vmul.f32 %v78_v12, %v62_v10  ;;  %v46_v18 = vld [vmem:[%s463_s1 + $0x68] sm:$0xff]  ;;  %v60_v23 = vld [vmem:[%s464_s2 + $0x58] sm:$0xff]  ;;  %v75_v24 = vld [vmem:[%s465_s3 + $0x50] sm:$0xff] }
   0x6   :  { %v111_v13 = vadd.f32 %v95_v7, %v47_v0  ;;  %v112_v14 = vadd.f32 %v96_v8, %v48_v1  ;;  %v109_v20 = vadd.f32 %v93_v15, %v45_v17  ;;  %v76_v25 = vld [vmem:[%s465_s3 + $0x58] sm:$0xff]  ;;  %v91_v27 = vmul.f32 %v75_v24, %v59_v22  ;;  %v43_v29 = vld [vmem:[%s463_s1 + $0x50] sm:$0xff]  ;;  %v57_v33 = vld [vmem:[%s464_s2 + $0x40] sm:$0xff] }
   0x7   :  { %v110_v21 = vadd.f32 %v94_v16, %v46_v18  ;;  %v92_v28 = vmul.f32 %v76_v25, %v60_v23  ;;  %v44_v30 = vld [vmem:[%s463_s1 + $0x58] sm:$0xff] }
   0x8   :  { %v122_v19 = vpack.c.bf16 %v112_v14, %v111_v13  ;;  %v107_v31 = vadd.f32 %v91_v27, %v43_v29 }
   0x9   :  { %v121_v26 = vpack.c.bf16 %v110_v21, %v109_v20  ;;  %v108_v32 = vadd.f32 %v92_v28, %v44_v30 }
   0xa   :  { %207 = vmatpush3.bf16.xpose.msra.mxu0 %v122_v19 }
   0xb   :  { %208 = vmatprep.subr.bf16.mxu0 %v251_v3 }
  0x12   :  { %209 = vmatpush3.bf16.xpose.msra.mxu0 %v121_v26 }
  0x13   :  { %12 = vsyncpa [#allocation4], 0  ;;  %210 = vmatprep.subr.bf16.mxu0 %v251_v3  ;;  %v58_v34 = vld [vmem:[%s464_s2 + $0x48] sm:$0xff]  ;;  %v73_v35 = vld [vmem:[%s465_s3 + $0x40] sm:$0xff]  ;;  %v120_v37 = vpack.c.bf16 %v108_v32, %v107_v31  ;;  %v176_v28 = vlaneseq }
  0x14   :  { %v74_v36 = vld [vmem:[%s465_s3 + $0x48] sm:$0xff]  ;;  %v89_v38 = vmul.f32 %v73_v35, %v57_v33  ;;  %v41_v40 = vld [vmem:[%s463_s1 + $0x40] sm:$0xff]  ;;  %v55_v44 = vld [vmem:[%s464_s2 + $0x30] sm:$0xff] }
  0x15   :  { %v90_v39 = vmul.f32 %v74_v36, %v58_v34  ;;  %v42_v41 = vld [vmem:[%s463_s1 + $0x48] sm:$0xff]  ;;  %v56_v45 = vld [vmem:[%s464_s2 + $0x38] sm:$0xff]  ;;  %v71_v46 = vld [vmem:[%s465_s3 + $0x30] sm:$0xff]  ;;  %v177_v32 = vshrl.u32 %v176_v28, 7 }
  0x16   :  { %v105_v42 = vadd.f32 %v89_v38, %v41_v40  ;;  %v72_v47 = vld [vmem:[%s465_s3 + $0x38] sm:$0xff]  ;;  %v87_v49 = vmul.f32 %v71_v46, %v55_v44  ;;  %v39_v51 = vld [vmem:[%s463_s1 + $0x30] sm:$0xff]  ;;  %v53_v55 = vld [vmem:[%s464_s2 + $0x20] sm:$0xff] }
  0x17   :  { %v106_v43 = vadd.f32 %v90_v39, %v42_v41  ;;  %v88_v50 = vmul.f32 %v72_v47, %v56_v45  ;;  %v40_v52 = vld [vmem:[%s463_s1 + $0x38] sm:$0xff]  ;;  %v54_v56 = vld [vmem:[%s464_s2 + $0x28] sm:$0xff]  ;;  %v69_v57 = vld [vmem:[%s465_s3 + $0x20] sm:$0xff]  ;;  %v178_v34 = vsub.s32 0, %v177_v32 }
  0x18   :  { %v103_v53 = vadd.f32 %v87_v49, %v39_v51  ;;  %v70_v58 = vld [vmem:[%s465_s3 + $0x28] sm:$0xff]  ;;  %v85_v60 = vmul.f32 %v69_v57, %v53_v55  ;;  %v37_v62 = vld [vmem:[%s463_s1 + $0x20] sm:$0xff]  ;;  %v51_v2 = vld [vmem:[%s464_s2 + $0x10] sm:$0xff] }
  0x19   :  { %v119_v48 = vpack.c.bf16 %v106_v43, %v105_v42  ;;  %v104_v54 = vadd.f32 %v88_v50, %v40_v52  ;;  %v86_v61 = vmul.f32 %v70_v58, %v54_v56  ;;  %v38_v63 = vld [vmem:[%s463_s1 + $0x28] sm:$0xff]  ;;  %v52_v4 = vld [vmem:[%s464_s2 + $0x18] sm:$0xff]  ;;  %v67_v5 = vld [vmem:[%s465_s3 + $0x10] sm:$0xff] }
  0x1a   :  { %211 = vmatpush3.bf16.xpose.msra.mxu0 %v120_v37  ;;  %v101_v0 = vadd.f32 %v85_v60, %v37_v62  ;;  %v68_v6 = vld [vmem:[%s465_s3 + $0x18] sm:$0xff]  ;;  %v83_v8 = vmul.f32 %v67_v5, %v51_v2  ;;  %v35_v10 = vld [vmem:[%s463_s1 + $0x10] sm:$0xff]  ;;  %v49_v14 = vld [vmem:[%s464_s2] sm:$0xff] }
  0x1b   :  { %212 = vmatprep.subr.bf16.mxu0 %v251_v3  ;;  %v118_v59 = vpack.c.bf16 %v104_v54, %v103_v53  ;;  %v102_v1 = vadd.f32 %v86_v61, %v38_v63  ;;  %v84_v9 = vmul.f32 %v68_v6, %v52_v4  ;;  %v36_v11 = vld [vmem:[%s463_s1 + $0x18] sm:$0xff]  ;;  %v50_v15 = vld [vmem:[%s464_s2 + $0x8] sm:$0xff]  ;;  %v65_v16 = vld [vmem:[%s465_s3] sm:$0xff] }
  0x1c   :  { %v99_v12 = vadd.f32 %v83_v8, %v35_v10  ;;  %v66_v17 = vld [vmem:[%s465_s3 + $0x8] sm:$0xff]  ;;  %v81_v19 = vmul.f32 %v65_v16, %v49_v14  ;;  %v33_v21 = vld [vmem:[%s463_s1] sm:$0xff] }
  0x1d   :  { %v117_v7 = vpack.c.bf16 %v102_v1, %v101_v0  ;;  %v100_v13 = vadd.f32 %v84_v9, %v36_v11  ;;  %v82_v20 = vmul.f32 %v66_v17, %v50_v15  ;;  %v34_v22 = vld [vmem:[%s463_s1 + $0x8] sm:$0xff]  ;;  %v113_v26 = vld [vmem:[%s462_s0] sm:$0xff]  ;;  %s253_s0 = smov [#allocation3]  }
  0x1e   :  { %v97_v23 = vadd.f32 %v81_v19, %v33_v21  ;;  %v114_v27 = vpack.c.bf16 %v113_v26, %v113_v26  ;;  %v170_v29 = vld [vmem:[%s467_s5] sm:$0x1]  ;;  %s189_s10 = sshll.u32 %s253_s0, 4  ;;  %s190_s10 = int_to_ptr.vmem [resolvable:$true] %s189_s10 }
  0x1f   :  { %v116_v18 = vpack.c.bf16 %v100_v13, %v99_v12  ;;  %v98_v24 = vadd.f32 %v82_v20, %v34_v22  ;;  %v171_v30 = vld [vmem:[%s468_s6] sm:$0x1]  ;;  %s229_s5 = scalar_lea.vmem %s190_s10, 128  ;;  %p234_p1 = scmp.lt.s32.totalorder %s190_s10, %s190_s10 }
  0x20   :  { %v172_v31 = vmul.f32 %v171_v30, %v170_v29  ;;  %p230_p0 = scmp.ne.s32.totalorder %s190_s10, %s229_s5  ;;  %p235_p2 = scmp.lt.s32.totalorder %s229_s5, %s229_s5 }
  0x21   :  { %v115_v25 = vpack.c.bf16 %v98_v24, %v97_v23 }
  0x22   :  { %213 = vmatpush3.bf16.xpose.msra.mxu0 %v119_v48  ;;  %p236_p3 = por %p235_p2, %p234_p1 }
  0x23   :  { %214 = vmatprep.subr.bf16.mxu0 %v251_v3 }
  0x24   :  { %p237_p4 = pnand %p236_p3, %p230_p0 }
  0x2a   :  { %215 = vmatpush3.bf16.xpose.msra.mxu0 %v118_v59 }
  0x2b   :  { %216 = vmatprep.subr.bf16.mxu0 %v251_v3 }
  0x32   :  { %217 = vmatpush3.bf16.xpose.msra.mxu0 %v117_v7 }
  0x33   :  { %218 = vmatprep.subr.bf16.mxu0 %v251_v3 }
  0x3a   :  { %219 = vmatpush3.bf16.xpose.msra.mxu0 %v116_v18 }
  0x3b   :  { %220 = vmatprep.subr.bf16.mxu0 %v251_v3  ;;  %v169_v3 = vld [vmem:[%s466_s4] sm:$0x1] }
  0x3c   :  { %v173_v33 = vadd.f32 %v172_v31, %v169_v3 }
  0x3e   :  { %v179_v35 = vrot.slane %v173_v33, %v178_v34 }
  0x42   :  { %221 = vmatpush3.bf16.xpose.msra.mxu0 %v115_v25 }
  0x49   :  { %223 = vmatmul.mubr.bf16.vlgmr.msra.gmra.mxu0 %v114_v27 }
 0x109   :  { %v158_v36 = vpop.f32.mrf.mxu0 }
 0x10a   :  { %v181_v37 = vadd.f32 %v179_v35, %v158_v36 }
 0x10b   :  { %v224_v38 = vpop.f32.mrf.mxu0 }
 0x10c   :  { %182 = vst [vmem:[#allocation3] sm:$0xff] %v181_v37 }
 0x10d   :  { %v161_v39 = vpop.f32.mrf.mxu0 }
 0x10e   :  { %240 = shalt.err (!%p237_p4)
}
 0x10f   :  { %192 = dma.vmem_to_hbm [thread:$0]  %s190_s10, 128, %s469_s7, [#allocation4]   ;;  %v225_v40 = vpop.f32.mrf.mxu0 }
 0x110   :  { %249 = dma.done.wait [#allocation4], 128  }
 0x111   :  { %250 = vsyncadd [#allocation4], 4294967168 }
 0x112   :  { %196 = vsyncpa [#allocation4], 1 }

</bundles_post_ra>
